<compile_context>
chip_gen: v6e
topology: v6e:2x2x1
jax: 0.10.0
libtpu: 0.0.40
codegen_flags: <defaults>
</compile_context>

<pallas_src>
import functools

import jax
import jax.numpy as jnp
from jax.experimental import pallas as pl
from jax.experimental.pallas import tpu as pltpu


def _round_up(x, m):
    return ((x + m - 1) // m) * m


def _vmem_capacity_bytes():
    """Per-TensorCore VMEM capacity; conservative fallback if unqueryable."""
    try:
        info = pltpu.get_tpu_info()
        cap = getattr(info, "vmem_capacity_bytes", None)
        if cap:
            return int(cap)
    except Exception:
        pass
    return 64 << 20  # conservative: v7x per-TC VMEM


def gated_dense_kernel(x_ref, wh_ref, bh_ref, wg_ref, bg_ref, o_ref, *, activation=None):
    """One (tile_m, tile_n) output tile of GatedDense.

    x_ref : (tile_m, K)      activations
    wh/wg : (tile_n, K)      PyTorch-layout weights (contract on last dims)
    bh/bg : (1, tile_n)      f32 biases
    o_ref : (tile_m, tile_n)
    """
    x = x_ref[...]
    dims = (((1,), (1,)), ((), ()))  # contract last dim of both operands (x @ W^T)
    h = jax.lax.dot_general(x, wh_ref[...], dims,
                            preferred_element_type=jnp.float32) + bh_ref[...]
    g = jax.lax.dot_general(x, wg_ref[...], dims,
                            preferred_element_type=jnp.float32) + bg_ref[...]
    if activation is not None:
        h = activation(h)
    o_ref[...] = (h * jax.nn.sigmoid(g)).astype(o_ref.dtype)


def gated_dense(x, wh, bh, wg, bg, *, activation=None, tile_m=256, tile_n=256):
    """x: (B, K); wh, wg: (N, K) PyTorch layout; bh, bg: (N,). Returns (B, N)."""
    B, K = x.shape
    N = wh.shape[0]
    dtype = x.dtype
    itemsize = jnp.dtype(dtype).itemsize

    # Biases as (1, N) f32 rows (tiny; keeps the epilogue in f32 on every chip).
    bh2 = jnp.asarray(bh, jnp.float32).reshape(1, N)
    bg2 = jnp.asarray(bg, jnp.float32).reshape(1, N)

    tile_m = max(8, min(tile_m, _round_up(B, 8)))

    vmem_cap = _vmem_capacity_bytes()
    budget = int(0.70 * vmem_cap)

    def vmem_need(tn_pad):
        # All blocks double-buffered (Pallas default), epilogue f32 staging on top.
        return (2 * tile_m * K * itemsize          # x tile
                + 2 * 2 * tn_pad * K * itemsize    # wh + wg tiles
                + 2 * 2 * 8 * tn_pad * 4           # bh + bg tiles (sublane-padded)
                + 2 * tile_m * tn_pad * itemsize   # output tile
                + 3 * tile_m * tn_pad * 4)         # f32 h/g/product staging

    n_pad_full = _round_up(N, 128)
    if vmem_need(n_pad_full) <= budget:
        # Weights fully resident: x and weights each stream exactly once.
        tile_n, nt = N, 1
    else:
        tile_n = max(128, min(tile_n, n_pad_full))
        nt = pl.cdiv(N, tile_n)
        # TODO(synk): if even the tiled footprint misses the budget, K-tile (see top).

    mt = pl.cdiv(B, tile_m)

    vmem_limit = int(min(vmem_need(_round_up(tile_n, 128)) + (8 << 20),
                         int(0.75 * vmem_cap)))
    vmem_limit = max(vmem_limit, 16 << 20)

    # Grid-axis order: stream the larger of {x, weights} only once; the outer
    # (megacore-sharded) axis then duplicates only the smaller operand per TC.
    x_bytes = B * K * itemsize
    w_bytes = 2 * N * K * itemsize
    if nt == 1 or x_bytes >= w_bytes:
        # M outer, N inner: x streamed once; weight blocks re-fetched per M tile
        # (or resident when nt == 1, since their block index never changes).
        grid = (mt, nt)
        x_map = lambda i, j: (i, 0)
        w_map = lambda i, j: (j, 0)
        b_map = lambda i, j: (0, j)
        o_map = lambda i, j: (i, j)
    else:
        # N outer, M inner: weights streamed once; x re-fetched per N tile.
        grid = (nt, mt)
        x_map = lambda j, i: (i, 0)
        w_map = lambda j, i: (j, 0)
        b_map = lambda j, i: (0, j)
        o_map = lambda j, i: (i, j)

    cost = pl.CostEstimate(
        flops=4 * B * K * N,                      # two (B,K)x(K,N) matmuls
        transcendentals=B * N,                    # sigmoid exp
        bytes_accessed=(B * K + 2 * N * K + B * N) * itemsize + 2 * N * 4,
    )

    out = pl.pallas_call(
        functools.partial(gated_dense_kernel, activation=activation),
        out_shape=jax.ShapeDtypeStruct((B, N), dtype),
        grid_spec=pltpu.PrefetchScalarGridSpec(
            num_scalar_prefetch=0,
            grid=grid,
            in_specs=[
                pl.BlockSpec((tile_m, K), x_map),   # x row tile
                pl.BlockSpec((tile_n, K), w_map),   # Wh tile (N-major, PyTorch layout)
                pl.BlockSpec((1, tile_n), b_map),   # bh tile
                pl.BlockSpec((tile_n, K), w_map),   # Wg tile
                pl.BlockSpec((1, tile_n), b_map),   # bg tile
            ],
            out_specs=pl.BlockSpec((tile_m, tile_n), o_map),
        ),
        compiler_params=pltpu.CompilerParams(
            dimension_semantics=("parallel", "parallel"),
            vmem_limit_bytes=vmem_limit,
        ),
        cost_estimate=cost,
    )(x, wh, bh2, wg, bg2)

    return out


if __name__ == "__main__":
    key = jax.random.PRNGKey(0)
    B, K, N = 16, 32, 32   # batch, input_size, output_size

    k_x, k_wh, k_bh, k_wg, k_bg = jax.random.split(key, 5)
    # Deterministic synthetic parameters (PyTorch nn.Linear shapes: W (N,K), b (N,))
    bound = 1.0 / jnp.sqrt(K)
    x = jax.random.normal(k_x, (B, K), dtype=jnp.float32)
    wh = jax.random.uniform(k_wh, (N, K), minval=-bound, maxval=bound, dtype=jnp.float32)
    bh = jax.random.uniform(k_bh, (N,), minval=-bound, maxval=bound, dtype=jnp.float32)
    wg = jax.random.uniform(k_wg, (N, K), minval=-bound, maxval=bound, dtype=jnp.float32)
    bg = jax.random.uniform(k_bg, (N,), minval=-bound, maxval=bound, dtype=jnp.float32)

    out = gated_dense(x, wh, bh, wg, bg)
    out = jax.block_until_ready(out)

    # Pure-JAX reference check (activation=None path of the PyTorch module)
    ref = (x @ wh.T + bh) * jax.nn.sigmoid(x @ wg.T + bg)
    assert out.shape == ref.shape, f"shape mismatch {out.shape} vs {ref.shape}"
    assert jnp.allclose(out, ref, atol=1e-5, rtol=1e-5), "mismatch vs reference"

    print("KERNEL_OK")
</pallas_src>

<mosaic_0001>
module attributes {stable_mosaic.version = 11 : i64} {
  func.func @gated_dense_kernel(%arg0: i32, %arg1: i32, %arg2: memref<16x32xf32, #tpu.memory_space<vmem>>, %arg3: memref<32x32xf32, #tpu.memory_space<vmem>>, %arg4: memref<1x32xf32, #tpu.memory_space<vmem>>, %arg5: memref<32x32xf32, #tpu.memory_space<vmem>>, %arg6: memref<1x32xf32, #tpu.memory_space<vmem>>, %arg7: memref<16x32xf32, #tpu.memory_space<vmem>>) attributes {dimension_semantics = [#tpu.dimension_semantics<parallel>, #tpu.dimension_semantics<parallel>], iteration_bounds = array<i64: 1, 1>, scalar_prefetch = 0 : i64, scratch_operands = 0 : i64, tpu.core_type = #tpu.core_type<tc>, window_params = [{transform_indices = @transform_0, window_bounds = array<i64: 16, 32>}, {transform_indices = @transform_1, window_bounds = array<i64: 32, 32>}, {transform_indices = @transform_2, window_bounds = array<i64: 1, 32>}, {transform_indices = @transform_3, window_bounds = array<i64: 32, 32>}, {transform_indices = @transform_4, window_bounds = array<i64: 1, 32>}, {transform_indices = @transform_5, window_bounds = array<i64: 16, 32>}]} {
    %c0 = arith.constant 0 : index
    %c0_0 = arith.constant 0 : index
    %0 = vector.load %arg2[%c0, %c0_0] : memref<16x32xf32, #tpu.memory_space<vmem>>, vector<16x32xf32>
    %c0_1 = arith.constant 0 : index
    %c0_2 = arith.constant 0 : index
    %1 = vector.load %arg3[%c0_1, %c0_2] : memref<32x32xf32, #tpu.memory_space<vmem>>, vector<32x32xf32>
    %cst = arith.constant dense<0.000000e+00> : vector<16x32xf32>
    %2 = tpu.matmul %0, %1, %cst {dimension_numbers = #tpu.dot_dimension_numbers<[1], [1], [0], [0], [0, 0, 1, 0], [], []>} : vector<16x32xf32>, vector<32x32xf32>, vector<16x32xf32> -> vector<16x32xf32>
    %c0_3 = arith.constant 0 : index
    %c0_4 = arith.constant 0 : index
    %3 = vector.load %arg4[%c0_3, %c0_4] : memref<1x32xf32, #tpu.memory_space<vmem>>, vector<1x32xf32>
    %4 = vector.broadcast %3 : vector<1x32xf32> to vector<16x32xf32>
    %5 = arith.addf %2, %4 : vector<16x32xf32>
    %c0_5 = arith.constant 0 : index
    %c0_6 = arith.constant 0 : index
    %6 = vector.load %arg5[%c0_5, %c0_6] : memref<32x32xf32, #tpu.memory_space<vmem>>, vector<32x32xf32>
    %cst_7 = arith.constant dense<0.000000e+00> : vector<16x32xf32>
    %7 = tpu.matmul %0, %6, %cst_7 {dimension_numbers = #tpu.dot_dimension_numbers<[1], [1], [0], [0], [0, 0, 1, 0], [], []>} : vector<16x32xf32>, vector<32x32xf32>, vector<16x32xf32> -> vector<16x32xf32>
    %c0_8 = arith.constant 0 : index
    %c0_9 = arith.constant 0 : index
    %8 = vector.load %arg6[%c0_8, %c0_9] : memref<1x32xf32, #tpu.memory_space<vmem>>, vector<1x32xf32>
    %9 = vector.broadcast %8 : vector<1x32xf32> to vector<16x32xf32>
    %10 = arith.addf %7, %9 : vector<16x32xf32>
    %11 = arith.negf %10 : vector<16x32xf32>
    %12 = math.exp %11 : vector<16x32xf32>
    %cst_10 = arith.constant 1.000000e+00 : f32
    %13 = vector.broadcast %cst_10 : f32 to vector<16x32xf32>
    %14 = arith.addf %13, %12 : vector<16x32xf32>
    %15 = arith.divf %13, %14 : vector<16x32xf32>
    %16 = arith.mulf %5, %15 : vector<16x32xf32>
    %c0_11 = arith.constant 0 : index
    %c0_12 = arith.constant 0 : index
    %17 = vector.load %arg7[%c0_11, %c0_12] : memref<16x32xf32, #tpu.memory_space<vmem>>, vector<16x32xf32>
    tpu.vector_store %arg7[%c0_11, %c0_12], %16 {strides = array<i32>} : memref<16x32xf32, #tpu.memory_space<vmem>>, vector<16x32xf32>,
    return
  }
  func.func @transform_0(%arg0: i32, %arg1: i32) -> (i32, i32) {
    %c0_i32 = arith.constant 0 : i32
    %c0_i32_0 = arith.constant 0 : i32
    return %arg0, %c0_i32 : i32, i32
  }
  func.func @transform_1(%arg0: i32, %arg1: i32) -> (i32, i32) {
    %c0_i32 = arith.constant 0 : i32
    %c0_i32_0 = arith.constant 0 : i32
    return %arg1, %c0_i32 : i32, i32
  }
  func.func @transform_2(%arg0: i32, %arg1: i32) -> (i32, i32) {
    %c0_i32 = arith.constant 0 : i32
    %c0_i32_0 = arith.constant 0 : i32
    return %c0_i32, %arg1 : i32, i32
  }
  func.func @transform_3(%arg0: i32, %arg1: i32) -> (i32, i32) {
    %c0_i32 = arith.constant 0 : i32
    %c0_i32_0 = arith.constant 0 : i32
    return %arg1, %c0_i32 : i32, i32
  }
  func.func @transform_4(%arg0: i32, %arg1: i32) -> (i32, i32) {
    %c0_i32 = arith.constant 0 : i32
    %c0_i32_0 = arith.constant 0 : i32
    return %c0_i32, %arg1 : i32, i32
  }
  func.func @transform_5(%arg0: i32, %arg1: i32) -> (i32, i32) {
    %c0_i32 = arith.constant 0 : i32
    return %arg0, %arg1 : i32, i32
  }
}

</mosaic_0001>

<bundles_post_ra>
// kernel: tpu_custom_call.1
= control target key start
LH: loop header
LB: loop body
LE: loop exit
PB: predicated region body
PF: predicated region fallthrough
CT: control target
= control target key end

     0   :  { %10 = vsyncpa [#allocation3], 0  ;;  %s539_s0 = inlined_call_operand.hbm [shape: f32[16,32], index: 0, kind: input, shape index: {}]   ;;  %s540_s1 = inlined_call_operand.hbm [shape: f32[32,32], index: 1, kind: input, shape index: {}]   ;;  %s541_s2 = inlined_call_operand.vmem [shape: f32[1,32], index: 2, kind: input, shape index: {}]   ;;  %s542_s3 = inlined_call_operand.hbm [shape: f32[32,32], index: 3, kind: input, shape index: {}]   ;;  %s543_s4 = inlined_call_operand.vmem [shape: f32[1,32], index: 4, kind: input, shape index: {}]   ;;  %s544_s5 = inlined_call_operand.hbm [shape: f32[16,32], index: 5, kind: output, shape index: {}]  }
   0x1   :  { %11 = vsyncpa [#allocation6], 0 }
   0x2   :  { %12 = vsyncpa [#allocation4], 0  ;;  %s451_s18 = smov [#allocation5]   ;;  %s452_s20 = smov [#allocation2]  }
   0x3   :  { %s30_s19 = sshll.u32 %s451_s18, 4  ;;  %s18_s21 = sshll.u32 %s452_s20, 4  ;;  %s31_s19 = int_to_ptr.vmem [resolvable:$true] %s30_s19  ;;  %s19_s21 = int_to_ptr.vmem [resolvable:$true] %s18_s21 }
   0x4   :  { %s373_s22 = scalar_lea.vmem %s31_s19, 512  ;;  %p378_p1 = scmp.lt.s32.totalorder %s31_s19, %s31_s19 }
   0x5   :  { %p374_p0 = scmp.ne.s32.totalorder %s31_s19, %s373_s22  ;;  %p379_p2 = scmp.lt.s32.totalorder %s373_s22, %s373_s22 }
   0x7   :  { %p380_p3 = por %p379_p2, %p378_p1 }
   0x9   :  { %p381_p4 = pnand %p380_p3, %p374_p0 }
   0xb   :  { %384 = shalt.err (!%p381_p4)
}
   0xc   :  { %s453_s23 = smov 128   ;;  %s454_s24 = smov 8  }
   0xd   :  { %36 = dma.hbm_to_vmem [thread:$0]  %s540_s1, 512, %s31_s19, [#allocation6], %s453_s23, %s453_s23, %s454_s24  }
   0xe   :  { %s393_s27 = scalar_lea.vmem %s19_s21, 256  ;;  %p398_p6 = scmp.lt.s32.totalorder %s19_s21, %s19_s21 }
   0xf   :  { %p394_p5 = scmp.ne.s32.totalorder %s19_s21, %s393_s27  ;;  %p399_p7 = scmp.lt.s32.totalorder %s393_s27, %s393_s27 }
  0x11   :  { %p400_p8 = por %p399_p7, %p398_p6 }
  0x13   :  { %p401_p9 = pnand %p400_p8, %p394_p5 }
  0x15   :  { %404 = shalt.err (!%p401_p9)
}
  0x16   :  { %24 = dma.hbm_to_vmem [thread:$0]  %s539_s0, 256, %s19_s21, [#allocation3], %s453_s23, %s453_s23, %s454_s24  }
  0x17   :  { %s455_s30 = smov [#allocation7]  }
  0x18   :  { %s44_s6 = sshll.u32 %s455_s30, 4  ;;  %s45_s6 = int_to_ptr.vmem [resolvable:$true] %s44_s6 }
  0x19   :  { %s413_s7 = scalar_lea.vmem %s45_s6, 512  ;;  %p418_p11 = scmp.lt.s32.totalorder %s45_s6, %s45_s6 }
  0x1a   :  { %p414_p10 = scmp.ne.s32.totalorder %s45_s6, %s413_s7  ;;  %p419_p12 = scmp.lt.s32.totalorder %s413_s7, %s413_s7 }
  0x1c   :  { %p420_p13 = por %p419_p12, %p418_p11 }
  0x1e   :  { %p421_p0 = pnand %p420_p13, %p414_p10 }
  0x20   :  { %424 = shalt.err (!%p421_p0)
}
  0x21   :  { %50 = dma.hbm_to_vmem [thread:$0]  %s542_s3, 512, %s45_s6, [#allocation6], %s453_s23, %s453_s23, %s454_s24  }
  0x22   :  { %445 = dma.done.wait [#allocation3], 256  }
  0x23   :  { %446 = vsyncadd [#allocation3], 4294967040 }
  0x24   :  { %447 = dma.done.wait [#allocation6], 1024  }
  0x25   :  { %448 = vsyncadd [#allocation6], 4294966272  ;;  %vm75_vm0 = vcmask 261120   ;;  %v172_v0 = vld [vmem:[#allocation7 + $0x18] sm:$0xff]  ;;  %v171_v1 = vld [vmem:[#allocation7 + $0x10] sm:$0xff] }
  0x26   :  { %340 = vmatprep.subr.msk.mxu1 %vm75_vm0, %v172_v0  ;;  %v62_v2 = vld [vmem:[#allocation2] sm:$0xff]  ;;  %v67_v3 = vld [vmem:[#allocation5 + $0x18] sm:$0xff]  ;;  %v170_v5 = vld [vmem:[#allocation7 + $0x8] sm:$0xff] }
  0x27   :  { %341 = vmatpush3.xpose.msk.msra.mxu1 %vm75_vm0, %v172_v0  ;;  %348 = vmatprep.mubr.msk.f32.mxu1 %vm75_vm0, %v62_v2  ;;  %v66_v4 = vld [vmem:[#allocation5 + $0x10] sm:$0xff]  ;;  %v65_v6 = vld [vmem:[#allocation5 + $0x8] sm:$0xff]  ;;  %v169_v7 = vld [vmem:[#allocation7] sm:$0xff] }
  0x28   :  { %342 = vmatprep.subr.msk.mxu1 %vm75_vm0, %v171_v1  ;;  %329 = vmatprep.subr.msk.mxu0 %vm75_vm0, %v67_v3  ;;  %v64_v8 = vld [vmem:[#allocation5] sm:$0xff]  ;;  %v63_v9 = vld [vmem:[#allocation2 + $0x8] sm:$0xff]  ;;  %v308_v10 = vld [vmem:[%s543_s4] ss:$0 sm:$0xff]  ;;  %s456_s4 = smov [#allocation8]  }
  0x29   :  { %330 = vmatpush3.xpose.msk.msra.mxu0 %vm75_vm0, %v67_v3  ;;  %337 = vmatprep.mubr.msk.f32.mxu0 %vm75_vm0, %v62_v2  ;;  %v301_v22 = vld [vmem:[%s541_s2] ss:$0 sm:$0xff]  ;;  %s288_s11 = sshll.u32 %s456_s4, 4  ;;  %s289_s11 = int_to_ptr.vmem [resolvable:$true] %s288_s11 }
  0x2a   :  { %331 = vmatprep.subr.msk.mxu0 %vm75_vm0, %v66_v4  ;;  %s425_s12 = scalar_lea.vmem %s289_s11, 256  ;;  %p430_p2 = scmp.lt.s32.totalorder %s289_s11, %s289_s11 }
  0x2b   :  { %343 = vmatpush3.xpose.msk.msra.mxu1 %vm75_vm0, %v171_v1  ;;  %p426_p1 = scmp.ne.s32.totalorder %s289_s11, %s425_s12  ;;  %p431_p3 = scmp.lt.s32.totalorder %s425_s12, %s425_s12 }
  0x2c   :  { %344 = vmatprep.subr.msk.mxu1 %vm75_vm0, %v170_v5 }
  0x2d   :  { %332 = vmatpush3.xpose.msk.msra.mxu0 %vm75_vm0, %v66_v4  ;;  %p432_p4 = por %p431_p3, %p430_p2 }
  0x2e   :  { %333 = vmatprep.subr.msk.mxu0 %vm75_vm0, %v65_v6 }
  0x2f   :  { %345 = vmatpush3.xpose.msk.msra.mxu1 %vm75_vm0, %v170_v5  ;;  %p433_p5 = pnand %p432_p4, %p426_p1 }
  0x30   :  { %346 = vmatprep.subr.msk.mxu1 %vm75_vm0, %v169_v7 }
  0x31   :  { %334 = vmatpush3.xpose.msk.msra.mxu0 %vm75_vm0, %v65_v6 }
  0x32   :  { %335 = vmatprep.subr.msk.mxu0 %vm75_vm0, %v64_v8 }
  0x33   :  { %347 = vmatpush3.xpose.msk.msra.mxu1 %vm75_vm0, %v169_v7 }
  0x35   :  { %336 = vmatpush3.xpose.msk.msra.mxu0 %vm75_vm0, %v64_v8 }
  0x36   :  { %349 = vmatmul.mubr.msk.f32.vlgmr.msra.gmra.mxu1 %vm75_vm0, %v63_v9 }
  0x38   :  { %338 = vmatmul.mubr.msk.f32.vlgmr.msra.gmra.mxu0 %vm75_vm0, %v63_v9 }
  0xf6   :  { %v350_v11 = vpop.f32.mrf.mxu1 }
  0xf7   :  { %v264_v12 = vadd.f32 %v350_v11, %v308_v10 }
  0xf8   :  { %v258_v13 = vpop.f32.mrf.mxu1  ;;  %v339_v21 = vpop.f32.mrf.mxu0 }
  0xf9   :  { %v316_v14 = vmul.f32 -1.442695, %v264_v12  ;;  %v259_v15 = vadd.f32 %v308_v10, %v258_v13  ;;  %v166_v23 = vadd.f32 %v339_v21, %v301_v22 }
  0xfa   :  { %v160_v24 = vpop.f32.mrf.mxu0 }
  0xfb   :  { %357 = vpow2.f32 %v316_v14  ;;  %v315_v16 = vmul.f32 -1.442695, %v259_v15  ;;  %v161_v27 = vadd.f32 %v301_v22, %v160_v24 }
  0xfd   :  { %359 = vpow2.f32 %v315_v16 }
 0x108   :  { %v358_v17 = vpop.eup %357 }
 0x109   :  { %v274_v18 = vadd.f32 1.0, %v358_v17 }
 0x10a   :  { %v360_v19 = vpop.eup %359 }
 0x10b   :  { %361 = vrcp.f32 %v274_v18  ;;  %v273_v20 = vadd.f32 1.0, %v360_v19 }
 0x10d   :  { %363 = vrcp.f32 %v273_v20 }
 0x118   :  { %v362_v25 = vpop.eup %361 }
 0x119   :  { %v280_v26 = vmul.f32 %v362_v25, %v166_v23 }
 0x11a   :  { %v364_v28 = vpop.eup %363 }
 0x11b   :  { %282 = vst.msk [vmem:[#allocation8 + $0x8] sm:$0xff] %vm75_vm0, %v280_v26  ;;  %v279_v29 = vmul.f32 %v364_v28, %v161_v27 }
 0x11d   :  { %281 = vst.msk [vmem:[#allocation8] sm:$0xff] %vm75_vm0, %v279_v29 }
 0x11e   :  { %436 = shalt.err (!%p433_p5)
}
 0x11f   :  { %294 = dma.vmem_to_hbm [thread:$0]  %s289_s11, 256, %s544_s5, [#allocation4], %s453_s23, %s453_s23, %s454_s24  }
 0x120   :  { %449 = dma.done.wait [#allocation4], 256  }
 0x121   :  { %450 = vsyncadd [#allocation4], 4294967040 }
 0x122   :  { %298 = vsyncpa [#allocation3], 1 }
 0x123   :  { %299 = vsyncpa [#allocation6], 1 }
 0x124   :  { %300 = vsyncpa [#allocation4], 1 }

</bundles_post_ra>
